<compile_context>
chip_gen: v6e
topology: v6e:2x2x1
jax: 0.10.0
libtpu: 0.0.40
codegen_flags: <defaults>
</compile_context>

<pallas_src>
import functools

import jax
import jax.numpy as jnp
from jax.experimental import pallas as pl
from jax.experimental.pallas import tpu as pltpu


LN_EPS = 1e-6  # DINOv2 LayerNorm eps


def _ln(x, g, b, eps=LN_EPS):
    """Row-wise LayerNorm in f32. g, b broadcast as (1, D)."""
    mu = jnp.mean(x, axis=-1, keepdims=True)
    var = jnp.mean(jnp.square(x - mu), axis=-1, keepdims=True)
    return (x - mu) * jax.lax.rsqrt(var + eps) * g + b


def _vec_sizes(dim, hidden):
    # order: n1_g, n1_b, qkv_b, proj_b, ls1, n2_g, n2_b, fc1_b, fc2_b, ls2
    return (dim, dim, 3 * dim, dim, dim, dim, dim, hidden, dim, dim)


# ------------- fused patch-embed + CLS prepend + pos-embed kernel ------------

def _embed_kernel(p_ref, w_ref, b_ref, cls_ref, pos_ref, o_ref,
                  *, batch, n_patches, seq):
    # p: (B*P, K) f32 ; w: (K, D) bf16 ; b/cls: (1, D) ; pos: (S, D) -> o: (B*S, D)
    emb = (jnp.dot(p_ref[...].astype(jnp.bfloat16), w_ref[...],
                   preferred_element_type=jnp.float32) + b_ref[...])    # (B*P, D)
    cls_row = cls_ref[...] + pos_ref[0:1, :]                            # (1, D)
    pos_tok = pos_ref[1:seq, :]                                         # (P, D)
    for b in range(batch):                                              # static unroll
        r0 = b * seq
        o_ref[r0:r0 + 1, :] = cls_row
        o_ref[r0 + 1:r0 + seq, :] = emb[b * n_patches:(b + 1) * n_patches, :] + pos_tok


def embed_tokens(patches2d, params, *, batch, n_patches, seq, dim):
    kernel = functools.partial(_embed_kernel, batch=batch,
                               n_patches=n_patches, seq=seq)
    return pl.pallas_call(
        kernel,
        out_shape=jax.ShapeDtypeStruct((batch * seq, dim), jnp.float32),
    )(patches2d, params["patch_w"], params["patch_b"],
      params["cls_token"], params["pos_embed"])


# ---------------------- fused transformer-stack kernel ----------------------

def _block_kernel(x_ref, vec_ref, qkvw_ref, projw_ref, fc1w_ref, fc2w_ref,
                  o_ref, acc_ref, *, bt, seq, heads, head_dim, dim, hidden):
    d = pl.program_id(1)

    @pl.when(d == 0)
    def _():
        acc_ref[...] = x_ref[...]

    x = acc_ref[...]                                    # (bt*seq, dim) f32, VMEM-resident

    # Unpack the coalesced per-block vector bundle (one DMA instead of ten).
    vec = vec_ref[0]                                    # (1, 15*dim)
    parts, off = [], 0
    for n in _vec_sizes(dim, hidden):
        parts.append(vec[:, off:off + n])
        off += n
    n1g, n1b, qkvb, projb, ls1, n2g, n2b, fc1b, fc2b, ls2 = parts

    # ----- attention branch: LN1 -> fused QKV -> heads-batched attention -> proj -----
    h = _ln(x, n1g, n1b)
    qkv = (jnp.dot(h.astype(jnp.bfloat16), qkvw_ref[0],
                   preferred_element_type=jnp.float32) + qkvb)          # (bt*seq, 3*dim)
    qkv16 = qkv.astype(jnp.bfloat16)

    q_parts, k_parts, v_parts = [], [], []
    for b in range(bt):                                 # static unroll (small tiles)
        r0 = b * seq
        for hh in range(heads):
            c0 = hh * head_dim
            q_parts.append(qkv16[r0:r0 + seq, c0:c0 + head_dim])
            k_parts.append(qkv16[r0:r0 + seq, dim + c0:dim + c0 + head_dim])
            v_parts.append(qkv16[r0:r0 + seq, 2 * dim + c0:2 * dim + c0 + head_dim])
    q3 = jnp.stack(q_parts)                             # (bt*heads, seq, head_dim) bf16
    k3 = jnp.stack(k_parts)
    v3 = jnp.stack(v_parts)

    # One batched MXU contraction for all (batch, head) score matrices; the
    # Dh**-0.5 scale is already folded into the q columns of qkv_w at init.
    s = jnp.einsum('bqd,bkd->bqk', q3, k3, preferred_element_type=jnp.float32)
    m = jnp.max(s, axis=-1, keepdims=True)
    p = jnp.exp(s - m)
    p = p * pl.reciprocal(jnp.sum(p, axis=-1, keepdims=True), approx=True)
    o3 = jnp.einsum('bqk,bkd->bqd', p.astype(jnp.bfloat16), v3,
                    preferred_element_type=jnp.float32)  # (bt*heads, seq, head_dim)

    attn = jnp.concatenate(
        [jnp.concatenate([o3[b * heads + hh] for hh in range(heads)], axis=-1)
         for b in range(bt)], axis=0)                    # (bt*seq, dim) lane-dense

    proj = (jnp.dot(attn.astype(jnp.bfloat16), projw_ref[0],
                    preferred_element_type=jnp.float32) + projb)
    x = x + ls1 * proj                                   # LayerScale + residual

    # ----- MLP branch: LN2 -> FC1 -> GELU -> FC2 -----
    h = _ln(x, n2g, n2b)
    h = (jnp.dot(h.astype(jnp.bfloat16), fc1w_ref[0],
                 preferred_element_type=jnp.float32) + fc1b)
    h = jax.nn.gelu(h, approximate=False)                # exact erf (PyTorch default)
    h = (jnp.dot(h.astype(jnp.bfloat16), fc2w_ref[0],
                 preferred_element_type=jnp.float32) + fc2b)
    x = x + ls2 * h

    acc_ref[...] = x                                     # carry to next depth step

    @pl.when(d == pl.num_programs(1) - 1)
    def _():
        o_ref[...] = x


def transformer(x2d, params, cfg, *, batch, batch_tile=None):
    BS, D = x2d.shape
    depth = cfg["depth"]
    heads = cfg["heads"]
    hidden = cfg["mlp_ratio"] * D
    seq = BS // batch

    bt = batch if batch_tile is None else batch_tile
    assert batch % bt == 0
    nb = batch // bt
    rows = bt * seq
    # Sub-batch tiles must present 8-aligned row blocks to the pipeliner.
    assert nb == 1 or rows % 8 == 0, "choose batch_tile so batch_tile*seq % 8 == 0"
    vtot = sum(_vec_sizes(D, hidden))

    kernel = functools.partial(_block_kernel, bt=bt, seq=seq, heads=heads,
                               head_dim=D // heads, dim=D, hidden=hidden)

    def wspec(r, c):
        return pl.BlockSpec((1, r, c), lambda i, d: (d, 0, 0))

    x_spec = pl.BlockSpec((rows, D), lambda i, d: (i, 0))

    return pl.pallas_call(
        kernel,
        out_shape=jax.ShapeDtypeStruct((BS, D), jnp.float32),
        grid_spec=pltpu.PrefetchScalarGridSpec(
            num_scalar_prefetch=0,
            grid=(nb, depth),
            in_specs=[
                x_spec,
                wspec(1, vtot),        # packed LN/bias/LayerScale bundle
                wspec(D, 3 * D),       # QKV weight (q-scale folded in)
                wspec(D, D),           # proj weight
                wspec(D, hidden),      # FC1 weight
                wspec(hidden, D),      # FC2 weight
            ],
            out_specs=x_spec,
            scratch_shapes=[pltpu.VMEM((rows, D), jnp.float32)],
        ),
        compiler_params=pltpu.CompilerParams(
            dimension_semantics=("parallel", "arbitrary"),
            vmem_limit_bytes=64 * 1024 * 1024),
    )(x2d, params["block_vec"], params["qkv_w"], params["proj_w"],
      params["fc1_w"], params["fc2_w"])


# ------------------- fused final-norm + classifier kernel -------------------

def _head_kernel(x_ref, g_ref, b_ref, w_ref, hb_ref, o_ref):
    # x: (B, D) CLS rows ; w: (D, 128-padded) bf16 -> o: (B, 128-padded) f32
    normed = _ln(x_ref[...], g_ref[...], b_ref[...])
    o_ref[...] = (jnp.dot(normed.astype(jnp.bfloat16), w_ref[...],
                          preferred_element_type=jnp.float32) + hb_ref[...])


def norm_and_head(x_cls, g, b, w_pad_bf16, b_pad):
    B, _ = x_cls.shape
    Np = w_pad_bf16.shape[1]
    return pl.pallas_call(
        _head_kernel,
        out_shape=jax.ShapeDtypeStruct((B, Np), jnp.float32),
    )(x_cls, g, b, w_pad_bf16, b_pad)


# -------------------------------- Parameters --------------------------------

def init_params(key, cfg):
    dim = cfg["dim"]
    depth = cfg["depth"]
    p = cfg["patch"]
    C = cfg["in_ch"]
    heads = cfg["heads"]
    hd = dim // heads
    hidden = cfg["mlp_ratio"] * dim
    npatch = (cfg["img"] // p) ** 2
    seq = npatch + 1
    nc = cfg["num_classes"]
    nc_pad = ((nc + 127) // 128) * 128          # lane-dense classifier output
    std = 0.02

    keys = iter(jax.random.split(key, 10))

    def nrm(shape):
        return std * jax.random.normal(next(keys), shape, jnp.float32)

    # Fold the Dh**-0.5 attention scale into the q columns of the QKV weight.
    qkv_w = nrm((depth, dim, 3 * dim))
    qkv_w = qkv_w.at[:, :, :dim].multiply(hd ** -0.5)

    # Packed per-block vector bundle; column order MUST match _vec_sizes():
    # [n1_g | n1_b | qkv_b | proj_b | ls1 | n2_g | n2_b | fc1_b | fc2_b | ls2]
    block_vec = jnp.concatenate([
        jnp.ones((depth, 1, dim), jnp.float32),            # n1_g
        jnp.zeros((depth, 1, dim), jnp.float32),           # n1_b
        jnp.zeros((depth, 1, 3 * dim), jnp.float32),       # qkv_b (q part pre-scaled)
        jnp.zeros((depth, 1, dim), jnp.float32),           # proj_b
        jnp.full((depth, 1, dim), 1e-5, jnp.float32),      # LayerScale 1
        jnp.ones((depth, 1, dim), jnp.float32),            # n2_g
        jnp.zeros((depth, 1, dim), jnp.float32),           # n2_b
        jnp.zeros((depth, 1, hidden), jnp.float32),        # fc1_b
        jnp.zeros((depth, 1, dim), jnp.float32),           # fc2_b
        jnp.full((depth, 1, dim), 1e-5, jnp.float32),      # LayerScale 2
    ], axis=-1)

    params = {
        "patch_w": nrm((C * p * p, dim)).astype(jnp.bfloat16),   # conv as im2col matmul
        "patch_b": jnp.zeros((1, dim), jnp.float32),
        "cls_token": nrm((1, dim)),
        "pos_embed": nrm((seq, dim)),
        "norm_g": jnp.ones((1, dim), jnp.float32),
        "norm_b": jnp.zeros((1, dim), jnp.float32),
        "block_vec": block_vec,
        "qkv_w": qkv_w.astype(jnp.bfloat16),
        "proj_w": nrm((depth, dim, dim)).astype(jnp.bfloat16),
        "fc1_w": nrm((depth, dim, hidden)).astype(jnp.bfloat16),
        "fc2_w": nrm((depth, hidden, dim)).astype(jnp.bfloat16),
    }
    head_w = nrm((dim, nc))
    params["head_w"] = (jnp.zeros((dim, nc_pad), jnp.float32)
                        .at[:, :nc].set(head_w).astype(jnp.bfloat16))
    params["head_b"] = jnp.zeros((1, nc_pad), jnp.float32)
    return params


# --------------------------------- Forward -----------------------------------

def forward(params, x_nchw, cfg):
    B, C, H, W = x_nchw.shape
    p = cfg["patch"]
    D = cfg["dim"]
    Hn, Wn = H // p, W // p
    P = Hn * Wn
    S = P + 1

    # im2col (XLA glue): channel-major per patch, matching Conv2d (out, C, p, p) flatten
    patches = (x_nchw.reshape(B, C, Hn, p, Wn, p)
               .transpose(0, 2, 4, 1, 3, 5)
               .reshape(B * P, C * p * p))

    # Patch embedding + CLS prepend + pos-embed add fused in one Pallas kernel.
    # TODO(synk): pos-embed interpolation for non-native resolutions omitted
    #             (input resolution exactly matches the pos_embed grid).
    x0 = embed_tokens(patches, params, batch=B, n_patches=P, seq=S, dim=D)

    # Entire transformer stack in one fused Pallas kernel (whole batch per tile).
    x1 = transformer(x0, params, cfg, batch=B)

    # Final LN is row-wise, so LN(x)[:, 0] == LN(x[:, 0]); classify the CLS rows only.
    cls_rows = x1.reshape(B, S, D)[:, 0]
    logits_pad = norm_and_head(cls_rows, params["norm_g"], params["norm_b"],
                               params["head_w"], params["head_b"])
    return logits_pad[:, :cfg["num_classes"]]


# ----------------------------------- Main ------------------------------------

if __name__ == "__main__":
    cfg = dict(
        img=16, patch=4, in_ch=3,      # 4x4 patch grid -> 16 patches, seq = 17
        dim=128, depth=2, heads=2, mlp_ratio=4,
        num_classes=8,
    )
    key = jax.random.PRNGKey(0)
    pkey, xkey = jax.random.split(key)

    params = init_params(pkey, cfg)
    x = jax.random.normal(xkey, (2, cfg["in_ch"], cfg["img"], cfg["img"]), jnp.float32)

    logits = forward(params, x, cfg)
    logits = jax.block_until_ready(logits)

    assert logits.shape == (2, cfg["num_classes"])
    assert logits.dtype == jnp.float32
    assert bool(jnp.all(jnp.isfinite(logits)))
    print("KERNEL_OK")
</pallas_src>

<mosaic_0001>
module attributes {stable_mosaic.version = 11 : i64} {
  func.func @_embed_kernel(%arg0: memref<32x48xf32, #tpu.memory_space<vmem>>, %arg1: memref<48x128xbf16, #tpu.memory_space<vmem>>, %arg2: memref<1x128xf32, #tpu.memory_space<vmem>>, %arg3: memref<1x128xf32, #tpu.memory_space<vmem>>, %arg4: memref<17x128xf32, #tpu.memory_space<vmem>>, %arg5: memref<34x128xf32, #tpu.memory_space<vmem>>) attributes {dimension_semantics = [], scalar_prefetch = 0 : i64, scratch_operands = 0 : i64, tpu.core_type = #tpu.core_type<tc>} {
    %c0 = arith.constant 0 : index
    %c0_0 = arith.constant 0 : index
    %0 = vector.load %arg0[%c0, %c0_0] : memref<32x48xf32, #tpu.memory_space<vmem>>, vector<32x48xf32>
    %1 = arith.truncf %0 : vector<32x48xf32> to vector<32x48xbf16>
    %c0_1 = arith.constant 0 : index
    %c0_2 = arith.constant 0 : index
    %2 = vector.load %arg1[%c0_1, %c0_2] : memref<48x128xbf16, #tpu.memory_space<vmem>>, vector<48x128xbf16>
    %cst = arith.constant dense<0.000000e+00> : vector<32x128xf32>
    %3 = tpu.matmul %1, %2, %cst {dimension_numbers = #tpu.dot_dimension_numbers<[1], [0], [0], [1], [0, 0, 1, 1], [], []>} : vector<32x48xbf16>, vector<48x128xbf16>, vector<32x128xf32> -> vector<32x128xf32>
    %c0_3 = arith.constant 0 : index
    %c0_4 = arith.constant 0 : index
    %4 = vector.load %arg2[%c0_3, %c0_4] : memref<1x128xf32, #tpu.memory_space<vmem>>, vector<1x128xf32>
    %5 = vector.broadcast %4 : vector<1x128xf32> to vector<32x128xf32>
    %6 = arith.addf %3, %5 : vector<32x128xf32>
    %c0_5 = arith.constant 0 : index
    %c0_6 = arith.constant 0 : index
    %7 = vector.load %arg3[%c0_5, %c0_6] : memref<1x128xf32, #tpu.memory_space<vmem>>, vector<1x128xf32>
    %c0_7 = arith.constant 0 : index
    %c0_8 = arith.constant 0 : index
    %8 = vector.load %arg4[%c0_7, %c0_8] : memref<17x128xf32, #tpu.memory_space<vmem>>, vector<1x128xf32>
    %9 = arith.addf %7, %8 : vector<1x128xf32>
    %c1 = arith.constant 1 : index
    %c0_9 = arith.constant 0 : index
    %10 = vector.load %arg4[%c1, %c0_9] : memref<17x128xf32, #tpu.memory_space<vmem>>, vector<16x128xf32>
    %c0_10 = arith.constant 0 : index
    %c0_11 = arith.constant 0 : index
    %11 = vector.load %arg5[%c0_10, %c0_11] : memref<34x128xf32, #tpu.memory_space<vmem>>, vector<1x128xf32>
    tpu.vector_store %arg5[%c0_10, %c0_11], %9 {strides = array<i32>} : memref<34x128xf32, #tpu.memory_space<vmem>>, vector<1x128xf32>,
    %12 = vector.extract_strided_slice %6 {offsets = [0, 0], sizes = [16, 128], strides = [1, 1]} : vector<32x128xf32> to vector<16x128xf32>
    %13 = arith.addf %12, %10 : vector<16x128xf32>
    %c1_12 = arith.constant 1 : index
    %c0_13 = arith.constant 0 : index
    %14 = vector.load %arg5[%c1_12, %c0_13] : memref<34x128xf32, #tpu.memory_space<vmem>>, vector<16x128xf32>
    tpu.vector_store %arg5[%c1_12, %c0_13], %13 {strides = array<i32>} : memref<34x128xf32, #tpu.memory_space<vmem>>, vector<16x128xf32>,
    %c17 = arith.constant 17 : index
    %c0_14 = arith.constant 0 : index
    %15 = vector.load %arg5[%c17, %c0_14] : memref<34x128xf32, #tpu.memory_space<vmem>>, vector<1x128xf32>
    tpu.vector_store %arg5[%c17, %c0_14], %9 {strides = array<i32>} : memref<34x128xf32, #tpu.memory_space<vmem>>, vector<1x128xf32>,
    %16 = vector.extract_strided_slice %6 {offsets = [16, 0], sizes = [16, 128], strides = [1, 1]} : vector<32x128xf32> to vector<16x128xf32>
    %17 = arith.addf %16, %10 : vector<16x128xf32>
    %c18 = arith.constant 18 : index
    %c0_15 = arith.constant 0 : index
    %18 = vector.load %arg5[%c18, %c0_15] : memref<34x128xf32, #tpu.memory_space<vmem>>, vector<16x128xf32>
    tpu.vector_store %arg5[%c18, %c0_15], %17 {strides = array<i32>} : memref<34x128xf32, #tpu.memory_space<vmem>>, vector<16x128xf32>,
    return
  }
}

</mosaic_0001>

<bundles_post_ra>
// kernel: tpu_custom_call.1
= control target key start
LH: loop header
LB: loop body
LE: loop exit
PB: predicated region body
PF: predicated region fallthrough
CT: control target
= control target key end

     0   :  { %10 = vsyncpa [#allocation3], 0  ;;  %s372_s0 = inlined_call_operand.hbm [shape: f32[32,48], index: 0, kind: input, shape index: {}]   ;;  %s373_s1 = inlined_call_operand.hbm [shape: bf16[48,128], index: 1, kind: input, shape index: {}]   ;;  %s374_s2 = inlined_call_operand.vmem [shape: f32[1,128], index: 2, kind: input, shape index: {}]   ;;  %s375_s3 = inlined_call_operand.vmem [shape: f32[1,128], index: 3, kind: input, shape index: {}]   ;;  %s376_s4 = inlined_call_operand.hbm [shape: f32[17,128], index: 4, kind: input, shape index: {}]   ;;  %s377_s5 = inlined_call_operand.hbm [shape: f32[34,128], index: 5, kind: output, shape index: {}]  }
   0x1   :  { %11 = vsyncpa [#allocation6], 0 }
   0x2   :  { %12 = vsyncpa [#allocation4], 0  ;;  %s307_s18 = smov [#allocation5]  }
   0x3   :  { %s30_s19 = sshll.u32 %s307_s18, 4  ;;  %s31_s19 = int_to_ptr.vmem [resolvable:$true] %s30_s19 }
   0x4   :  { %s229_s20 = scalar_lea.vmem %s31_s19, 384  ;;  %p234_p1 = scmp.lt.s32.totalorder %s31_s19, %s31_s19 }
   0x5   :  { %p230_p0 = scmp.ne.s32.totalorder %s31_s19, %s229_s20  ;;  %p235_p2 = scmp.lt.s32.totalorder %s229_s20, %s229_s20 }
   0x7   :  { %p236_p3 = por %p235_p2, %p234_p1 }
   0x9   :  { %p237_p4 = pnand %p236_p3, %p230_p0 }
   0xb   :  { %240 = shalt.err (!%p237_p4)
}
   0xc   :  { %s308_s21 = smov 64   ;;  %s309_s22 = smov 4  }
   0xd   :  { %36 = dma.hbm_to_vmem [thread:$0]  %s373_s1, 384, %s31_s19, [#allocation6], %s308_s21, %s308_s21, %s309_s22  }
   0xe   :  { %s310_s25 = smov [#allocation2]  }
   0xf   :  { %s18_s26 = sshll.u32 %s310_s25, 4  ;;  %s19_s26 = int_to_ptr.vmem [resolvable:$true] %s18_s26 }
  0x10   :  { %s249_s27 = scalar_lea.vmem %s19_s26, 512  ;;  %p254_p6 = scmp.lt.s32.totalorder %s19_s26, %s19_s26 }
  0x11   :  { %p250_p5 = scmp.ne.s32.totalorder %s19_s26, %s249_s27  ;;  %p255_p7 = scmp.lt.s32.totalorder %s249_s27, %s249_s27 }
  0x13   :  { %p256_p8 = por %p255_p7, %p254_p6 }
  0x15   :  { %p257_p9 = pnand %p256_p8, %p250_p5 }
  0x17   :  { %260 = shalt.err (!%p257_p9)
}
  0x18   :  { %s311_s28 = smov 128   ;;  %s312_s29 = smov 8  }
  0x19   :  { %24 = dma.hbm_to_vmem [thread:$0]  %s372_s0, 512, %s19_s26, [#allocation3], %s311_s28, %s311_s28, %s312_s29  }
  0x1a   :  { %s313_s1 = smov [#allocation7]  }
  0x1b   :  { %s46_s7 = sshll.u32 %s313_s1, 4  ;;  %s47_s7 = int_to_ptr.vmem [resolvable:$true] %s46_s7 }
  0x1c   :  { %s269_s8 = scalar_lea.vmem %s47_s7, 384  ;;  %p274_p11 = scmp.lt.s32.totalorder %s47_s7, %s47_s7 }
  0x1d   :  { %p270_p10 = scmp.ne.s32.totalorder %s47_s7, %s269_s8  ;;  %p275_p12 = scmp.lt.s32.totalorder %s269_s8, %s269_s8 }
  0x1f   :  { %p276_p13 = por %p275_p12, %p274_p11 }
  0x21   :  { %p277_p0 = pnand %p276_p13, %p270_p10 }
  0x23   :  { %280 = shalt.err (!%p277_p0)
}
  0x24   :  { %52 = dma.hbm_to_vmem [thread:$0]  %s376_s4, 384, %s47_s7, [#allocation6], %s311_s28, %s311_s28, %s312_s29  }
  0x25   :  { %301 = dma.done.wait [#allocation3], 512  }
  0x26   :  { %302 = vsyncadd [#allocation3], 4294966784 }
  0x27   :  { %303 = dma.done.wait [#allocation6], 768  }
  0x28   :  { %304 = vsyncadd [#allocation6], 4294966528  ;;  %v218_v0 = vld [vmem:[#allocation5 + $0x10] sm:$0xff]   ;;  %v219_v1 = vld [vmem:[#allocation5 + $0x8] sm:$0xff]   ;;  %vm100_vm0 = vcmask 392192  }
  0x29   :  { %200 = vmatprep.subr.bf16.mxu0 %v218_v0  ;;  %v63_v2 = vld [vmem:[#allocation2] sm:$0xff]  ;;  %v64_v3 = vld [vmem:[#allocation2 + $0x8] sm:$0xff]  ;;  %v65_v6 = vld [vmem:[#allocation2 + $0x10] sm:$0xff] }
  0x2a   :  { %201 = vmatpush3.bf16.msra.mxu0 %v218_v0  ;;  %v220_v4 = vld [vmem:[#allocation5] sm:$0xff]   ;;  %v67_v5 = vpack.c.bf16 %v64_v3, %v63_v2  ;;  %v66_v7 = vld [vmem:[#allocation2 + $0x18] sm:$0xff] }
  0x2b   :  { %202 = vmatprep.subr.bf16.mxu0 %v219_v1  ;;  %v68_v8 = vpack.c.bf16 %v66_v7, %v65_v6  ;;  %v156_v9 = vld [vmem:[%s375_s3] sm:$0x1]  ;;  %v157_v10 = vld [vmem:[#allocation7] sm:$0x1]  ;;  %v160_v20 = vld [vmem:[#allocation7 + $0x9] sm:$0xff]  ;;  %s314_s3 = smov [#allocation8]  }
  0x2c   :  { %206 = vmatprep.mubr.msk.bf16.mxu0 %vm100_vm0, %v67_v5  ;;  %v158_v11 = vadd.f32 %v157_v10, %v156_v9  ;;  %v189_v12 = vld [vmem:[%s374_s2] ss:$0 sm:$0xff]  ;;  %s176_s13 = sshll.u32 %s314_s3, 4  ;;  %s177_s13 = int_to_ptr.vmem [resolvable:$true] %s176_s13 }
  0x2d   :  { %v159_v14 = vld [vmem:[#allocation7 + $0x1] sm:$0xff]  ;;  %s281_s2 = scalar_lea.vmem %s177_s13, 640  ;;  %p286_p2 = scmp.lt.s32.totalorder %s177_s13, %s177_s13 }
  0x2e   :  { %203 = vmatpush3.bf16.msra.mxu0 %v219_v1  ;;  %161 = vst [vmem:[#allocation8] sm:$0x1] %v158_v11  ;;  %166 = vst [vmem:[#allocation8 + $0x11] sm:$0x1] %v158_v11  ;;  %p282_p1 = scmp.ne.s32.totalorder %s177_s13, %s281_s2  ;;  %p287_p3 = scmp.lt.s32.totalorder %s281_s2, %s281_s2 }
  0x2f   :  { %204 = vmatprep.subr.bf16.mxu0 %v220_v4 }
  0x30   :  { %p288_p4 = por %p287_p3, %p286_p2 }
  0x32   :  { %205 = vmatpush3.bf16.msra.mxu0 %v220_v4  ;;  %p289_p5 = pnand %p288_p4, %p282_p1 }
  0x35   :  { %207 = vmatmul.mubr.msk.bf16.vlgmr.msra.gmra.mxu0 %vm100_vm0, %v68_v8 }
  0xf5   :  { %v208_v13 = vpop.f32.mrf.mxu0 }
  0xf6   :  { %v150_v15 = vadd.f32 %v208_v13, %v189_v12 }
  0xf7   :  { %v141_v16 = vpop.f32.mrf.mxu0 }
  0xf8   :  { %v167_v17 = vadd.f32 %v159_v14, %v150_v15  ;;  %v142_v18 = vadd.f32 %v189_v12, %v141_v16 }
  0xf9   :  { %v209_v19 = vpop.f32.mrf.mxu0 }
  0xfa   :  { %169 = vst [vmem:[#allocation8 + $0x12] sm:$0xff] %v167_v17  ;;  %v162_v21 = vadd.f32 %v159_v14, %v142_v18  ;;  %v153_v22 = vadd.f32 %v209_v19, %v189_v12 }
  0xfb   :  { %v144_v23 = vpop.f32.mrf.mxu0 }
  0xfc   :  { %164 = vst [vmem:[#allocation8 + $0x1] sm:$0xff] %v162_v21  ;;  %v168_v24 = vadd.f32 %v160_v20, %v153_v22  ;;  %v145_v25 = vadd.f32 %v189_v12, %v144_v23 }
  0xfe   :  { %170 = vst [vmem:[#allocation8 + $0x1a] sm:$0xff] %v168_v24  ;;  %v163_v26 = vadd.f32 %v160_v20, %v145_v25 }
 0x100   :  { %165 = vst [vmem:[#allocation8 + $0x9] sm:$0xff] %v163_v26 }
 0x101   :  { %292 = shalt.err (!%p289_p5)
}
 0x102   :  { %182 = dma.vmem_to_hbm [thread:$0]  %s177_s13, 640, %s377_s5, [#allocation4], %s311_s28, %s311_s28, %s312_s29  }
 0x103   :  { %305 = dma.done.wait [#allocation4], 640  }
 0x104   :  { %306 = vsyncadd [#allocation4], 4294966656 }
 0x105   :  { %186 = vsyncpa [#allocation3], 1 }
 0x106   :  { %187 = vsyncpa [#allocation6], 1 }
 0x107   :  { %188 = vsyncpa [#allocation4], 1 }

</bundles_post_ra>
